<compile_context>
chip_gen: v6e
topology: v6e:2x2x1
jax: 0.10.0
libtpu: 0.0.40
codegen_flags: <defaults>
</compile_context>

<pallas_src>
import functools

import jax
import jax.numpy as jnp
from jax.experimental import pallas as pl
from jax.experimental.pallas import tpu as pltpu


def _loss_m4_kernel(B, TB, needs_mask,
                    ypred0_ref, ytrue0_ref, ypred1_ref, ytrue1_ref,
                    cc_ref, rep_ref, seg_ref, out_ref):
    logits = ypred0_ref[...].astype(jnp.float32)           # (TB, K)
    t0 = ytrue0_ref[...].astype(jnp.float32)               # (TB, K)

    # log_softmax / softmax over clusters.
    m = jnp.max(logits, axis=1, keepdims=True)
    z = logits - m
    lse = jnp.log(jnp.sum(jnp.exp(z), axis=1, keepdims=True))
    logp = z - lse                                          # log_softmax
    p = jnp.exp(logp)                                       # softmax

    # KLDivLoss pointwise term t * (log t - logp); 0*log(0) := 0.
    safe_t = jnp.where(t0 > 0.0, t0, 1.0)
    kl_pt = jnp.where(t0 > 0.0, t0 * (jnp.log(safe_t) - logp), 0.0)

    # Lane-dense delta work.
    yp1 = ypred1_ref[...].astype(jnp.float32)               # (TB, K*D)
    yt1 = ytrue1_ref[...].astype(jnp.float32)               # (TB, D)
    cc = cc_ref[...].astype(jnp.float32)                    # (1, K*D)
    rep = rep_ref[...]                                      # (D, K*D) broadcast selector
    seg = seg_ref[...]                                      # (K*D, K) segment-mean (1/D)

    # Broadcast ytrue1 across the K clusters with a tiny MXU matmul
    # (rep[d, k*D + d'] = 1 iff d == d'), avoiding cross-lane XLU work.
    tgt = jnp.dot(yt1, rep, preferred_element_type=jnp.float32)         # (TB, K*D)

    # Fused: diff = ytrue1 - (cluster_centers + ypred1); single live temp.
    diff = tgt - cc - yp1                                                # (TB, K*D)

    # Per-cluster mean over D via a segment-sum matmul on the MXU.
    per_cluster = jnp.dot(diff * diff, seg,
                          preferred_element_type=jnp.float32)            # (TB, K)
    row_l2 = jnp.sum(p * per_cluster, axis=1, keepdims=True)             # (TB, 1)

    if needs_mask:
        # Valid-row mask (only compiled when B % TB != 0).
        row0 = pl.program_id(0) * TB
        rows = row0 + jax.lax.broadcasted_iota(jnp.int32, (TB, 1), 0)
        valid = (rows < B).astype(jnp.float32)                           # (TB, 1)
        kl_partial = jnp.sum(kl_pt * valid)
        l2_partial = jnp.sum(row_l2 * valid)
    else:
        kl_partial = jnp.sum(kl_pt)
        l2_partial = jnp.sum(row_l2)

    # Single lane-dense partial-sum slab: lane 0 = KL, lane 1 = l2.
    lane = jax.lax.broadcasted_iota(jnp.int32, (1, 8, 128), 2)
    out_ref[...] = (jnp.where(lane == 0, kl_partial, 0.0)
                    + jnp.where(lane == 1, l2_partial, 0.0))


def loss_m4(ypred0, ypred1, ytrue0, ytrue1, cluster_centers, alpha, *, tile_b=None):
    """Scalar loss = KL(log_softmax(ypred0) || ytrue0) + alpha * weighted MSE."""
    B, K = ypred0.shape
    Kc, D = cluster_centers.shape
    assert Kc == K and ypred1.shape == (B, K, D) and ytrue1.shape == (B, D)
    KD = K * D

    # Batch tile: keep the double-buffered (TB, K*D) f32 block <= ~8 MiB so it
    # fits every generation's default scoped VMEM (v5e is the smallest).
    if tile_b is None:
        bytes_per_row = KD * 4
        tile_b = max(8, min(512, (4 * 1024 * 1024) // bytes_per_row))
    tile_b = max(8, (int(tile_b) // 8) * 8)
    tile_b = min(tile_b, max(8, ((B + 7) // 8) * 8))
    num_tiles = pl.cdiv(B, tile_b)
    Bp = num_tiles * tile_b
    needs_mask = Bp != B

    # Lane-dense layout for the streaming tensor (row-major reshape is free).
    ypred1_flat = ypred1.reshape(B, KD)
    cc_flat = cluster_centers.reshape(1, KD)

    # Constant selector matrices (hoisted out of the kernel; resident in VMEM).
    d_i = jnp.arange(D, dtype=jnp.int32)[:, None]
    j_i = jnp.arange(KD, dtype=jnp.int32)[None, :]
    rep = (j_i % D == d_i).astype(jnp.float32)                       # (D, K*D)
    r_i = jnp.arange(KD, dtype=jnp.int32)[:, None]
    c_i = jnp.arange(K, dtype=jnp.int32)[None, :]
    seg = (r_i // D == c_i).astype(jnp.float32) * (1.0 / D)          # (K*D, K)

    if needs_mask:
        pad = ((0, Bp - B), (0, 0))
        ypred0 = jnp.pad(ypred0, pad)
        ytrue0 = jnp.pad(ytrue0, pad)
        ypred1_flat = jnp.pad(ypred1_flat, pad)
        ytrue1 = jnp.pad(ytrue1, pad)

    kernel = functools.partial(_loss_m4_kernel, B, tile_b, needs_mask)

    cost = pl.CostEstimate(
        flops=int(8 * B * KD + 12 * B * K + 2 * B * D * KD + 2 * B * KD * K),
        transcendentals=int(3 * B * K),
        bytes_accessed=int(4 * (B * KD + 2 * B * K + B * D + KD
                                + D * KD + KD * K + num_tiles * 8 * 128)),
    )

    parts = pl.pallas_call(
        kernel,
        grid_spec=pltpu.PrefetchScalarGridSpec(
            num_scalar_prefetch=0,
            grid=(num_tiles,),
            in_specs=[
                pl.BlockSpec((tile_b, K), lambda i: (i, 0)),    # ypred0 logits
                pl.BlockSpec((tile_b, K), lambda i: (i, 0)),    # ytrue0 target probs
                pl.BlockSpec((tile_b, KD), lambda i: (i, 0)),   # ypred1 deltas (lane-dense)
                pl.BlockSpec((tile_b, D), lambda i: (i, 0)),    # ytrue1 regression target
                pl.BlockSpec((1, KD), lambda i: (0, 0)),        # cluster centers (resident)
                pl.BlockSpec((D, KD), lambda i: (0, 0)),        # broadcast selector (resident)
                pl.BlockSpec((KD, K), lambda i: (0, 0)),        # segment-mean matrix (resident)
            ],
            out_specs=pl.BlockSpec((1, 8, 128), lambda i: (i, 0, 0)),  # per-tile partials
        ),
        out_shape=jax.ShapeDtypeStruct((num_tiles, 8, 128), jnp.float32),
        compiler_params=pltpu.CompilerParams(
            dimension_semantics=("parallel",),   # independent tiles -> both TCs on v7x
        ),
        cost_estimate=cost,
    )(ypred0, ytrue0, ypred1_flat, ytrue1, cc_flat, rep, seg)

    # Tiny final reduction + alpha in plain JAX (alpha never enters the kernel).
    l1 = jnp.sum(parts[:, 0, 0]) / (B * K)   # KLDivLoss reduction='mean'
    l2 = jnp.sum(parts[:, 0, 1]) / B
    return l1 + jnp.float32(alpha) * l2


def _reference(ypred0, ypred1, ytrue0, ytrue1, cc, alpha):
    logp = jax.nn.log_softmax(ypred0, axis=1)
    p = jax.nn.softmax(ypred0, axis=1)
    safe_t = jnp.where(ytrue0 > 0, ytrue0, 1.0)
    kl_pt = jnp.where(ytrue0 > 0, ytrue0 * (jnp.log(safe_t) - logp), 0.0)
    l1 = jnp.mean(kl_pt)
    y = cc[None, :, :] + ypred1
    per_cluster = jnp.mean((ytrue1[:, None, :] - y) ** 2, axis=2)   # (B, K)
    l2 = jnp.mean(jnp.sum(p * per_cluster, axis=1))
    return l1 + alpha * l2


if __name__ == "__main__":
    B, K, D = 256, 16, 8        # batch, n_clusters, delta/center dimensionality
    alpha = 0.5

    key = jax.random.PRNGKey(0)
    k1, k2, k3, k4, k5 = jax.random.split(key, 5)

    # Deterministic synthetic "kmeans.cluster_centers_"
    cluster_centers = jax.random.normal(k1, (K, D), dtype=jnp.float32)

    ypred0 = jax.random.normal(k2, (B, K), dtype=jnp.float32)            # logits
    ypred1 = 0.1 * jax.random.normal(k3, (B, K, D), dtype=jnp.float32)   # deltas
    ytrue0 = jax.nn.softmax(jax.random.normal(k4, (B, K)), axis=1).astype(jnp.float32)
    ytrue1 = jax.random.normal(k5, (B, D), dtype=jnp.float32)

    # tile_b=64 -> 4 grid steps, exercising the pipelined/tiled path.
    out = loss_m4(ypred0, ypred1, ytrue0, ytrue1, cluster_centers, alpha, tile_b=64)
    out = jax.block_until_ready(out)

    ref = _reference(ypred0, ypred1, ytrue0, ytrue1, cluster_centers, alpha)
    assert jnp.allclose(out, ref, rtol=1e-4, atol=1e-5), (out, ref)

    # Also exercise the non-divisible-batch (masked) path once.
    out2 = loss_m4(ypred0[:200], ypred1[:200], ytrue0[:200], ytrue1[:200],
                   cluster_centers, alpha, tile_b=64)
    ref2 = _reference(ypred0[:200], ypred1[:200], ytrue0[:200], ytrue1[:200],
                      cluster_centers, alpha)
    out2 = jax.block_until_ready(out2)
    assert jnp.allclose(out2, ref2, rtol=1e-4, atol=1e-5), (out2, ref2)

    print("KERNEL_OK")
</pallas_src>

<mosaic_0001>
module attributes {stable_mosaic.version = 11 : i64} {
  func.func @_loss_m4_kernel(%arg0: i32, %arg1: memref<64x16xf32, #tpu.memory_space<vmem>>, %arg2: memref<64x16xf32, #tpu.memory_space<vmem>>, %arg3: memref<64x128xf32, #tpu.memory_space<vmem>>, %arg4: memref<64x8xf32, #tpu.memory_space<vmem>>, %arg5: memref<1x128xf32, #tpu.memory_space<vmem>>, %arg6: memref<8x128xf32, #tpu.memory_space<vmem>>, %arg7: memref<128x16xf32, #tpu.memory_space<vmem>>, %arg8: memref<1x8x128xf32, #tpu.memory_space<vmem>>) attributes {dimension_semantics = [#tpu.dimension_semantics<parallel>], iteration_bounds = array<i64: 4>, scalar_prefetch = 0 : i64, scratch_operands = 0 : i64, tpu.core_type = #tpu.core_type<tc>, window_params = [{transform_indices = @transform_0, window_bounds = array<i64: 64, 16>}, {transform_indices = @transform_1, window_bounds = array<i64: 64, 16>}, {transform_indices = @transform_2, window_bounds = array<i64: 64, 128>}, {transform_indices = @transform_3, window_bounds = array<i64: 64, 8>}, {pipeline_mode = #tpu.pipeline_mode<synchronous>, transform_indices = @transform_4, window_bounds = array<i64: 1, 128>}, {pipeline_mode = #tpu.pipeline_mode<synchronous>, transform_indices = @transform_5, window_bounds = array<i64: 8, 128>}, {pipeline_mode = #tpu.pipeline_mode<synchronous>, transform_indices = @transform_6, window_bounds = array<i64: 128, 16>}, {transform_indices = @transform_7, window_bounds = array<i64: 1, 8, 128>}]} {
    %c0 = arith.constant 0 : index
    %c0_0 = arith.constant 0 : index
    %0 = vector.load %arg1[%c0, %c0_0] : memref<64x16xf32, #tpu.memory_space<vmem>>, vector<64x16xf32>
    %c0_1 = arith.constant 0 : index
    %c0_2 = arith.constant 0 : index
    %1 = vector.load %arg2[%c0_1, %c0_2] : memref<64x16xf32, #tpu.memory_space<vmem>>, vector<64x16xf32>
    %cst = arith.constant dense<0xFF800000> : vector<64xf32>
    %2 = vector.multi_reduction <maximumf>, %0, %cst [1] : vector<64x16xf32> to vector<64xf32>
    %3 = vector.shape_cast %2 : vector<64xf32> to vector<64x1xf32>
    %4 = vector.broadcast %3 : vector<64x1xf32> to vector<64x16xf32>
    %5 = arith.subf %0, %4 : vector<64x16xf32>
    %6 = math.exp %5 : vector<64x16xf32>
    %cst_3 = arith.constant dense<0.000000e+00> : vector<64xf32>
    %7 = vector.multi_reduction <add>, %6, %cst_3 [1] : vector<64x16xf32> to vector<64xf32>
    %8 = vector.shape_cast %7 : vector<64xf32> to vector<64x1xf32>
    %9 = math.log %8 : vector<64x1xf32>
    %10 = vector.broadcast %9 : vector<64x1xf32> to vector<64x16xf32>
    %11 = arith.subf %5, %10 : vector<64x16xf32>
    %12 = math.exp %11 : vector<64x16xf32>
    %cst_4 = arith.constant 0.000000e+00 : f32
    %13 = vector.broadcast %cst_4 : f32 to vector<64x16xf32>
    %14 = arith.cmpf ogt, %1, %13 : vector<64x16xf32>
    %cst_5 = arith.constant 1.000000e+00 : f32
    %15 = vector.broadcast %cst_5 : f32 to vector<64x16xf32>
    %16 = arith.select %14, %1, %15 : vector<64x16xi1>, vector<64x16xf32>
    %cst_6 = arith.constant 0.000000e+00 : f32
    %17 = vector.broadcast %cst_6 : f32 to vector<64x16xf32>
    %18 = arith.cmpf ogt, %1, %17 : vector<64x16xf32>
    %19 = math.log %16 : vector<64x16xf32>
    %20 = arith.subf %19, %11 : vector<64x16xf32>
    %21 = arith.mulf %1, %20 : vector<64x16xf32>
    %cst_7 = arith.constant 0.000000e+00 : f32
    %22 = vector.broadcast %cst_7 : f32 to vector<64x16xf32>
    %23 = arith.select %18, %21, %22 : vector<64x16xi1>, vector<64x16xf32>
    %c0_8 = arith.constant 0 : index
    %c0_9 = arith.constant 0 : index
    %24 = vector.load %arg3[%c0_8, %c0_9] : memref<64x128xf32, #tpu.memory_space<vmem>>, vector<64x128xf32>
    %c0_10 = arith.constant 0 : index
    %c0_11 = arith.constant 0 : index
    %25 = vector.load %arg4[%c0_10, %c0_11] : memref<64x8xf32, #tpu.memory_space<vmem>>, vector<64x8xf32>
    %c0_12 = arith.constant 0 : index
    %c0_13 = arith.constant 0 : index
    %26 = vector.load %arg5[%c0_12, %c0_13] : memref<1x128xf32, #tpu.memory_space<vmem>>, vector<1x128xf32>
    %c0_14 = arith.constant 0 : index
    %c0_15 = arith.constant 0 : index
    %27 = vector.load %arg6[%c0_14, %c0_15] : memref<8x128xf32, #tpu.memory_space<vmem>>, vector<8x128xf32>
    %c0_16 = arith.constant 0 : index
    %c0_17 = arith.constant 0 : index
    %28 = vector.load %arg7[%c0_16, %c0_17] : memref<128x16xf32, #tpu.memory_space<vmem>>, vector<128x16xf32>
    %cst_18 = arith.constant dense<0.000000e+00> : vector<64x128xf32>
    %29 = tpu.matmul %25, %27, %cst_18 {dimension_numbers = #tpu.dot_dimension_numbers<[1], [0], [0], [1], [0, 0, 1, 1], [], []>} : vector<64x8xf32>, vector<8x128xf32>, vector<64x128xf32> -> vector<64x128xf32>
    %30 = vector.broadcast %26 : vector<1x128xf32> to vector<64x128xf32>
    %31 = arith.subf %29, %30 : vector<64x128xf32>
    %32 = arith.subf %31, %24 : vector<64x128xf32>
    %33 = arith.mulf %32, %32 : vector<64x128xf32>
    %cst_19 = arith.constant dense<0.000000e+00> : vector<64x16xf32>
    %34 = tpu.matmul %33, %28, %cst_19 {dimension_numbers = #tpu.dot_dimension_numbers<[1], [0], [0], [1], [0, 0, 1, 1], [], []>} : vector<64x128xf32>, vector<128x16xf32>, vector<64x16xf32> -> vector<64x16xf32>
    %35 = arith.mulf %12, %34 : vector<64x16xf32>
    %cst_20 = arith.constant dense<0.000000e+00> : vector<64xf32>
    %36 = vector.multi_reduction <add>, %35, %cst_20 [1] : vector<64x16xf32> to vector<64xf32>
    %37 = vector.shape_cast %36 : vector<64xf32> to vector<64x1xf32>
    %38 = vector.shape_cast %23 : vector<64x16xf32> to vector<1x64x16xf32>
    %cst_21 = arith.constant dense<0.000000e+00> : vector<1xf32>
    %39 = vector.multi_reduction <add>, %38, %cst_21 [1, 2] : vector<1x64x16xf32> to vector<1xf32>
    %40 = vector.shape_cast %39 : vector<1xf32> to vector<1x1x1xf32>
    %41 = vector.extract %40[0, 0, 0] : f32 from vector<1x1x1xf32>
    %42 = vector.shape_cast %37 : vector<64x1xf32> to vector<1x64x1xf32>
    %cst_22 = arith.constant dense<0.000000e+00> : vector<1xf32>
    %43 = vector.multi_reduction <add>, %42, %cst_22 [1, 2] : vector<1x64x1xf32> to vector<1xf32>
    %44 = vector.shape_cast %43 : vector<1xf32> to vector<1x1x1xf32>
    %45 = vector.extract %44[0, 0, 0] : f32 from vector<1x1x1xf32>
    %46 = tpu.iota {dimensions = array<i32: 2>} : vector<1x8x128xi32>
    %c0_i32 = arith.constant 0 : i32
    %47 = vector.broadcast %c0_i32 : i32 to vector<1x8x128xi32>
    %48 = arith.cmpi eq, %46, %47 : vector<1x8x128xi32>
    %cst_23 = arith.constant 0.000000e+00 : f32
    %49 = vector.broadcast %41 : f32 to vector<1x8x128xf32>
    %50 = vector.broadcast %cst_23 : f32 to vector<1x8x128xf32>
    %51 = arith.select %48, %49, %50 : vector<1x8x128xi1>, vector<1x8x128xf32>
    %c1_i32 = arith.constant 1 : i32
    %52 = vector.broadcast %c1_i32 : i32 to vector<1x8x128xi32>
    %53 = arith.cmpi eq, %46, %52 : vector<1x8x128xi32>
    %cst_24 = arith.constant 0.000000e+00 : f32
    %54 = vector.broadcast %45 : f32 to vector<1x8x128xf32>
    %55 = vector.broadcast %cst_24 : f32 to vector<1x8x128xf32>
    %56 = arith.select %53, %54, %55 : vector<1x8x128xi1>, vector<1x8x128xf32>
    %57 = arith.addf %51, %56 : vector<1x8x128xf32>
    %c0_25 = arith.constant 0 : index
    %c0_26 = arith.constant 0 : index
    %c0_27 = arith.constant 0 : index
    %58 = vector.load %arg8[%c0_25, %c0_26, %c0_27] : memref<1x8x128xf32, #tpu.memory_space<vmem>>, vector<1x8x128xf32>
    tpu.vector_store %arg8[%c0_25, %c0_26, %c0_27], %57 {strides = array<i32>} : memref<1x8x128xf32, #tpu.memory_space<vmem>>, vector<1x8x128xf32>,
    return
  }
  func.func @transform_0(%arg0: i32) -> (i32, i32) {
    %c0_i32 = arith.constant 0 : i32
    %c0_i32_0 = arith.constant 0 : i32
    return %arg0, %c0_i32 : i32, i32
  }
  func.func @transform_1(%arg0: i32) -> (i32, i32) {
    %c0_i32 = arith.constant 0 : i32
    %c0_i32_0 = arith.constant 0 : i32
    return %arg0, %c0_i32 : i32, i32
  }
  func.func @transform_2(%arg0: i32) -> (i32, i32) {
    %c0_i32 = arith.constant 0 : i32
    %c0_i32_0 = arith.constant 0 : i32
    return %arg0, %c0_i32 : i32, i32
  }
  func.func @transform_3(%arg0: i32) -> (i32, i32) {
    %c0_i32 = arith.constant 0 : i32
    %c0_i32_0 = arith.constant 0 : i32
    return %arg0, %c0_i32 : i32, i32
  }
  func.func @transform_4(%arg0: i32) -> (i32, i32) {
    %c0_i32 = arith.constant 0 : i32
    %c0_i32_0 = arith.constant 0 : i32
    %c0_i32_1 = arith.constant 0 : i32
    return %c0_i32, %c0_i32_0 : i32, i32
  }
  func.func @transform_5(%arg0: i32) -> (i32, i32) {
    %c0_i32 = arith.constant 0 : i32
    %c0_i32_0 = arith.constant 0 : i32
    %c0_i32_1 = arith.constant 0 : i32
    return %c0_i32, %c0_i32_0 : i32, i32
  }
  func.func @transform_6(%arg0: i32) -> (i32, i32) {
    %c0_i32 = arith.constant 0 : i32
    %c0_i32_0 = arith.constant 0 : i32
    %c0_i32_1 = arith.constant 0 : i32
    return %c0_i32, %c0_i32_0 : i32, i32
  }
  func.func @transform_7(%arg0: i32) -> (i32, i32, i32) {
    %c0_i32 = arith.constant 0 : i32
    %c0_i32_0 = arith.constant 0 : i32
    %c0_i32_1 = arith.constant 0 : i32
    return %arg0, %c0_i32, %c0_i32_0 : i32, i32, i32
  }
}

</mosaic_0001>

<bundles_post_ra>
// kernel: tpu_custom_call.1
= control target key start
LH: loop header
LB: loop body
LE: loop exit
PB: predicated region body
PF: predicated region fallthrough
CT: control target
= control target key end

     0   :  { %12 = vsyncpa [#allocation3], 0  ;;  %s1761_s0 = inlined_call_operand.vmem [shape: f32[256,16], index: 0, kind: input, shape index: {}]   ;;  %s1762_s1 = inlined_call_operand.vmem [shape: f32[256,16], index: 1, kind: input, shape index: {}]   ;;  %s1763_s2 = inlined_call_operand.vmem [shape: f32[256,128], index: 2, kind: input, shape index: {}]   ;;  %s1764_s3 = inlined_call_operand.vmem [shape: f32[256,8], index: 3, kind: input, shape index: {}]   ;;  %s1765_s4 = inlined_call_operand.vmem [shape: f32[1,128], index: 4, kind: input, shape index: {}]   ;;  %s1766_s5 = inlined_call_operand.vmem [shape: f32[8,128], index: 5, kind: input, shape index: {}]   ;;  %s1767_s6 = inlined_call_operand.vmem [shape: f32[128,16], index: 6, kind: input, shape index: {}]   ;;  %s1768_s7 = inlined_call_operand.hbm [shape: f32[4,8,128], index: 7, kind: output, shape index: {}]  }
   0x1   :  { %14 = vsyncpa [#allocation3 + $0x1], 0  ;;  %s1388_s24 = smov 0   ;;  %s1390_s25 = smov 0  }
   0x2   :  { %s1392_s26 = smov 0   ;;  %s1394_s27 = smov 0  }
   0x3 LB: > { %s1409_s28 = sadd.s32 4294967295, %s1345_s27   ;;  %s1029_s29 = sadd.s32 4294967294, %s1345_s27   ;;  %s1345_s27 = sphi %s1394_s27, %s1774_s27   ;;  %s1341_s26 = sphi %s1392_s26, %s1773_s26   ;;  %s1337_s25 = sphi %s1390_s25, %s1772_s25   ;;  %s1333_s24 = sphi %s1388_s24, %s1771_s24  }
   0x4   : > { %s1413_s30 = sadd.s32 1, %s1345_s27   ;;  %s194_s8 = sadd.s32 1, %s1341_s26 }
   0x5   : > { %s191_s9 = ssub.s32 %s1345_s27, %s1413_s30  ;;  %p204_p0 = scmp.ne.s32.totalorder %s1341_s26, %s1337_s25 }
   0x6   : > { %p192_p1 = scmp.eq.s32.totalorder %s191_s9, 0  ;;  %p205_p2 = scmp.eq.s32.totalorder %s1409_s28, 3 }
   0x7   : > { %p210_p3 = scmp.ne.s32.totalorder %s1337_s25, %s1333_s24  ;;  %p211_p4 = scmp.eq.s32.totalorder %s1029_s29, 3 }
   0x8   : > { %s1424_s10 = scalar_select %p192_p1, %s1341_s26, %s194_s8  }
   0x9   : > { %p1426_p5 = por %p205_p2, %p204_p0  ;;  %p1430_p6 = por %p211_p4, %p210_p3 }
   0xa   : > { %p1032_p7 = scmp.ge.s32.totalorder %s1345_s27, 1  ;;  %p274_p8 = scmp.lt.s32.totalorder %s1345_s27, 5 }
   0xc   : > { %p275_p9 = pnand %p1032_p7, %p274_p8 }
   0xd   : > { %s1034_s15 = sshll.u32 (!%p275_p9), %s1409_s28, 3  ;;  %s1052_s9 = sshll.u32 (!%p275_p9), %s1409_s28, 7 }
   0xe   : > { %278 = sbr.rel (%p275_p9) target bundleno = 796 (0x31c), region = 48  ;;  %p322_p10 = scmp.lt.s32.totalorder (!%p275_p9), %s1034_s15, 31 }
   0xf   : > { %s1347_s28 = smov (!%p275_p9), [#allocation2]  }
  0x13   : > { %v547_v0 = vld [vmem:[%s1766_s5] sm:$0xff]  ;;  %s1776_s15 = smov (!%p322_p10, %s1034_s15), 31  ;;  %vm564_vm0 = vcmask 64512   ;;  %vm361_vm1 = vcmask 130048   ;;  %v563_v25 = vld [vmem:[%s1767_s6 + $0x78] sm:$0xff]  ;;  %v562_v26 = vld [vmem:[%s1767_s6 + $0x70] sm:$0xff] }
  0x14   : > { %1088 = vmatprep.subr.mxu0 %v547_v0  ;;  %s1440_s16 = sshll.u32 %s1776_s15, 3  ;;  %1146 = vmatprep.subr.mxu1 %v563_v25  ;;  %v561_v27 = vld [vmem:[%s1767_s6 + $0x68] sm:$0xff]  ;;  %v560_v28 = vld [vmem:[%s1767_s6 + $0x60] sm:$0xff]  ;;  %v559_v29 = vld [vmem:[%s1767_s6 + $0x58] sm:$0xff]  ;;  %vm885_vm10 = vcmask 7168  }
  0x15   : > { %1089 = vmatpush3.msra.mxu0 %v547_v0  ;;  %s1446_s19 = scalar_lea.vmem %s1764_s3, %s1440_s16  ;;  %s325_s22 = scalar_lea.vmem %s1761_s0, %s1440_s16  ;;  %1162 = vmatpush3.msra.mxu1 %v563_v25  ;;  %v558_v30 = vld [vmem:[%s1767_s6 + $0x50] sm:$0xff]  ;;  %v557_v31 = vld [vmem:[%s1767_s6 + $0x48] sm:$0xff]  ;;  %v556_v32 = vld [vmem:[%s1767_s6 + $0x40] sm:$0xff] }
  0x16   : > { %v538_v1 = vld [vmem:[%s1446_s19] sm:$0xff]  ;;  %v539_v2 = vld [vmem:[%s1446_s19 + $0x8] sm:$0xff]  ;;  %v540_v3 = vld [vmem:[%s1446_s19 + $0x10] sm:$0xff]  ;;  %1102 = vmatprep.subr.mxu0 %v563_v25  ;;  %1147 = vmatprep.subr.mxu1 %v562_v26  ;;  %s1592_s18 = scalar_lea.vmem %s1763_s2, %s1440_s16  ;;  %s1609_s23 = scalar_lea.vmem %s1762_s1, %s1440_s16 }
  0x17   : > { %1090 = vmatprep.mubr.msk.f32.mxu0 %vm564_vm0, %v538_v1  ;;  %v1456_v4 = vld [vmem:[%s325_s22] sm:$0xff]  ;;  %v1458_v5 = vld [vmem:[%s325_s22 + $0x10] sm:$0xff]  ;;  %v1465_v8 = vld [vmem:[%s325_s22 + $0x8] sm:$0xff]  ;;  %1163 = vmatpush3.msra.mxu1 %v562_v26  ;;  %s318_s16 = sand.u32 1, %s1337_s25  }
  0x18   : > { %1091 = vmatmul.mubr.msk.f32.vlgmr.msra.gmra.mxu0 %vm564_vm0, %v539_v2  ;;  %v362_v6 = vsel %vm361_vm1, %v1456_v4, -inf  ;;  %v368_v7 = vsel %vm361_vm1, %v1458_v5, -inf  ;;  %v541_v9 = vld [vmem:[%s1446_s19 + $0x18] sm:$0xff]  ;;  %v365_v11 = vsel %vm361_vm1, %v1465_v8, -inf  ;;  %v542_v12 = vld [vmem:[%s1446_s19 + $0x20] sm:$0xff]  ;;  %v1479_v15 = vld [vmem:[%s325_s22 + $0x28] sm:$0xff]  ;;  %1148 = vmatprep.subr.mxu1 %v561_v27 }
  0x19   : > { %363 = vmax.xlane.f32.xlu0 %v362_v6  ;;  %1093 = vmatprep.mubr.msk.f32.mxu0 %vm564_vm0, %v540_v3  ;;  %v1469_v10 = vld [vmem:[%s325_s22 + $0x18] sm:$0xff]  ;;  %v1476_v14 = vld [vmem:[%s325_s22 + $0x20] sm:$0xff]  ;;  %v543_v16 = vld [vmem:[%s1446_s19 + $0x28] sm:$0xff]  ;;  %v377_v19 = vsel %vm361_vm1, %v1479_v15, -inf  ;;  %s1033_s29 = sshll.u32 %s318_s16, 3  ;;  %s921_s20 = scalar_lea.sflag [#allocation3], %s318_s16 }
  0x1a   : > { %369 = vmax.xlane.f32.xlu1 %v368_v7  ;;  %v371_v13 = vsel %vm361_vm1, %v1469_v10, -inf  ;;  %v374_v17 = vsel %vm361_vm1, %v1476_v14, -inf  ;;  %v544_v18 = vld [vmem:[%s1446_s19 + $0x30] sm:$0xff]  ;;  %v1491_v21 = vld [vmem:[%s325_s22 + $0x38] sm:$0xff]  ;;  %1103 = vmatpush3.msra.mxu0 %v563_v25  ;;  %v553_v35 = vld [vmem:[%s1767_s6 + $0x28] sm:$0xff]  ;;  %s320_s14 = scalar_lea.vmem [#allocation2], %s1033_s29 }
  0x1b   : > { %v1488_v20 = vld [vmem:[%s325_s22 + $0x30] sm:$0xff]  ;;  %v545_v22 = vld [vmem:[%s1446_s19 + $0x38] sm:$0xff]  ;;  %v383_v24 = vsel %vm361_vm1, %v1491_v21, -inf  ;;  %1104 = vmatprep.subr.mxu0 %v562_v26  ;;  %1164 = vmatpush3.msra.mxu1 %v561_v27  ;;  %v552_v36 = vld [vmem:[%s1767_s6 + $0x20] sm:$0xff]  ;;  %s934_s15 = sshll.u32 %s320_s14, 4  ;;  %s932_s19 = scalar_lea.hbm %s1768_s7, %s1052_s9  ;;  %s935_s15 = int_to_ptr.vmem [resolvable:$true] %s934_s15 }
  0x1c   : > { %1094 = vmatmul.mubr.msk.f32.gmra.mxu0 %vm564_vm0, %v541_v9  ;;  %v380_v23 = vsel %vm361_vm1, %v1488_v20, -inf  ;;  %1149 = vmatprep.subr.mxu1 %v560_v28  ;;  %v555_v33 = vld [vmem:[%s1767_s6 + $0x38] sm:$0xff]  ;;  %v554_v34 = vld [vmem:[%s1767_s6 + $0x30] sm:$0xff]  ;;  %v549_v39 = vld [vmem:[%s1767_s6 + $0x8] sm:$0xff]  ;;  %s1285_s21 = scalar_lea.vmem %s935_s15, 128  ;;  %s1289_s22 = sshll.u32 %s1347_s28, 4  ;;  %s1290_s22 = int_to_ptr.vmem [resolvable:$false] %s1289_s22 }
  0x1d   : > { %366 = vmax.xlane.f32.xlu0 %v365_v11  ;;  %1096 = vmatprep.mubr.msk.f32.mxu0 %vm564_vm0, %v542_v12  ;;  %v551_v37 = vld [vmem:[%s1767_s6 + $0x18] sm:$0xff]  ;;  %v550_v38 = vld [vmem:[%s1767_s6 + $0x10] sm:$0xff]  ;;  %v548_v40 = vld [vmem:[%s1767_s6] sm:$0xff]  ;;  %p1286_p11 = scmp.ne.s32.totalorder %s935_s15, %s1285_s21  ;;  %p1292_p0 = scmp.lt.s32.totalorder %s935_s15, %s1290_s22 }
  0x1e   : > { %372 = vmax.xlane.f32.xlu1 %v371_v13  ;;  %1105 = vmatpush3.msra.mxu0 %v562_v26 }
  0x1f   : > { %1106 = vmatprep.subr.mxu0 %v561_v27  ;;  %1165 = vmatpush3.msra.mxu1 %v560_v28  ;;  %p1287_p12 = pnand %p1286_p11, %p1426_p5 }
  0x20   : > { %1097 = vmatmul.mubr.msk.f32.gmra.mxu0 %vm564_vm0, %v543_v16  ;;  %1150 = vmatprep.subr.mxu1 %v559_v29 }
  0x21   : > { %375 = vmax.xlane.f32.xlu0 %v374_v17  ;;  %1099 = vmatprep.mubr.msk.f32.mxu0 %vm564_vm0, %v544_v18  ;;  %v1050_v17 = vld [vmem:[%s1765_s4] ss:$0 sm:$0xff]  ;;  %p1288_p13 = pneg %p1287_p12 }
  0x22   : > { %378 = vmax.xlane.f32.xlu1 %v377_v19  ;;  %1107 = vmatpush3.msra.mxu0 %v561_v27  ;;  %v531_v19 = vld [vmem:[%s1592_s18 + $0x8] sm:$0xff]  ;;  %v533_v27 = vld [vmem:[%s1592_s18 + $0x18] sm:$0xff] }
  0x23   : > { %1108 = vmatprep.subr.mxu0 %v560_v28  ;;  %1166 = vmatpush3.msra.mxu1 %v559_v29 }
  0x24   : > { %1100 = vmatmul.mubr.msk.f32.gmra.mxu0 %vm564_vm0, %v545_v22  ;;  %1151 = vmatprep.subr.mxu1 %v558_v30 }
  0x25   : > { %381 = vmax.xlane.f32.xlu0 %v380_v23  ;;  %1109 = vmatpush3.msra.mxu0 %v560_v28 }
  0x26   : > { %384 = vmax.xlane.f32.xlu1 %v383_v24  ;;  %1110 = vmatprep.subr.mxu0 %v559_v29 }
  0x27   : > { %1111 = vmatpush3.msra.mxu0 %v559_v29  ;;  %1167 = vmatpush3.msra.mxu1 %v558_v30 }
  0x28   : > { %1112 = vmatprep.subr.mxu0 %v558_v30  ;;  %1152 = vmatprep.subr.mxu1 %v557_v31 }
  0x29   : > { %1113 = vmatpush3.msra.mxu0 %v558_v30  ;;  %1168 = vmatpush3.msra.mxu1 %v557_v31  ;;  %v532_v30 = vld [vmem:[%s1592_s18 + $0x10] sm:$0xff] }
  0x2a   : > { %1114 = vmatprep.subr.mxu0 %v557_v31  ;;  %1153 = vmatprep.subr.mxu1 %v556_v32 }
  0x2b   : > { %1115 = vmatpush3.msra.mxu0 %v557_v31  ;;  %1169 = vmatpush3.msra.mxu1 %v556_v32 }
  0x2c   : > { %1116 = vmatprep.subr.mxu0 %v556_v32  ;;  %1154 = vmatprep.subr.mxu1 %v555_v33 }
  0x2d   : > { %1117 = vmatpush3.msra.mxu0 %v556_v32  ;;  %1170 = vmatpush3.msra.mxu1 %v555_v33 }
  0x2e   : > { %1118 = vmatprep.subr.mxu0 %v555_v33  ;;  %1155 = vmatprep.subr.mxu1 %v554_v34 }
  0x2f   : > { %1119 = vmatpush3.msra.mxu0 %v555_v33  ;;  %1171 = vmatpush3.msra.mxu1 %v554_v34 }
  0x30   : > { %1120 = vmatprep.subr.mxu0 %v554_v34  ;;  %1156 = vmatprep.subr.mxu1 %v553_v35 }
  0x31   : > { %1121 = vmatpush3.msra.mxu0 %v554_v34  ;;  %1172 = vmatpush3.msra.mxu1 %v553_v35 }
  0x32   : > { %1122 = vmatprep.subr.mxu0 %v553_v35  ;;  %1157 = vmatprep.subr.mxu1 %v552_v36 }
  0x33   : > { %1123 = vmatpush3.msra.mxu0 %v553_v35  ;;  %1173 = vmatpush3.msra.mxu1 %v552_v36 }
  0x34   : > { %1124 = vmatprep.subr.mxu0 %v552_v36  ;;  %1158 = vmatprep.subr.mxu1 %v551_v37 }
  0x35   : > { %1125 = vmatpush3.msra.mxu0 %v552_v36  ;;  %1174 = vmatpush3.msra.mxu1 %v551_v37  ;;  %v535_v36 = vld [vmem:[%s1592_s18 + $0x28] sm:$0xff] }
  0x36   : > { %1126 = vmatprep.subr.mxu0 %v551_v37  ;;  %1159 = vmatprep.subr.mxu1 %v550_v38 }
  0x37   : > { %1127 = vmatpush3.msra.mxu0 %v551_v37  ;;  %1175 = vmatpush3.msra.mxu1 %v550_v38 }
  0x38   : > { %1128 = vmatprep.subr.mxu0 %v550_v38  ;;  %1160 = vmatprep.subr.mxu1 %v549_v39 }
  0x39   : > { %1129 = vmatpush3.msra.mxu0 %v550_v38  ;;  %1176 = vmatpush3.msra.mxu1 %v549_v39 }
  0x3a   : > { %1130 = vmatprep.subr.mxu0 %v549_v39  ;;  %1161 = vmatprep.subr.mxu1 %v548_v40 }
  0x3b   : > { %1131 = vmatpush3.msra.mxu0 %v549_v39  ;;  %1177 = vmatpush3.msra.mxu1 %v548_v40  ;;  %v534_v39 = vld [vmem:[%s1592_s18 + $0x20] sm:$0xff] }
  0x3c   : > { %1132 = vmatprep.subr.mxu0 %v548_v40 }
  0x3d   : > { %1133 = vmatpush3.msra.mxu0 %v548_v40 }
  0xa2   : > { %v364_v41 = vpop.xlane.xlu0 %363 }
  0xa3   : > { %v1549_v42 = vsub.f32 %v1456_v4, %v364_v41  ;;  %v370_v43 = vpop.xlane.xlu1 %369 }
  0xa4   : > { %v1552_v44 = vsub.f32 %v1458_v5, %v370_v43 }
  0xa5   : > { %v394_v45 = vmul.f32 1.442695, %v1549_v42 }
  0xa6   : > { %v398_v46 = vmul.f32 1.442695, %v1552_v44  ;;  %v367_v47 = vpop.xlane.xlu0 %366 }
  0xa7   : > { %1221 = vpow2.f32 %v394_v45  ;;  %v1557_v48 = vsub.f32 %v1465_v8, %v367_v47  ;;  %v373_v49 = vpop.xlane.xlu1 %372 }
  0xa8   : > { %1223 = vpow2.f32 %v398_v46  ;;  %v1560_v50 = vsub.f32 %v1469_v10, %v373_v49 }
  0xa9   : > { %v396_v51 = vmul.f32 1.442695, %v1557_v48 }
  0xaa   : > { %v400_v52 = vmul.f32 1.442695, %v1560_v50  ;;  %v376_v53 = vpop.xlane.xlu0 %375 }
  0xab   : > { %1225 = vpow2.f32 %v396_v51  ;;  %v1565_v54 = vsub.f32 %v1476_v14, %v376_v53  ;;  %v379_v55 = vpop.xlane.xlu1 %378  ;;  %v537_v51 = vld [vmem:[%s1592_s18 + $0x38] sm:$0xff]  ;;  %v536_v53 = vld [vmem:[%s1592_s18 + $0x30] sm:$0xff] }
  0xac   : > { %1227 = vpow2.f32 %v400_v52  ;;  %v1568_v56 = vsub.f32 %v1479_v15, %v379_v55 }
  0xad   : > { %v402_v57 = vmul.f32 1.442695, %v1565_v54 }
  0xae   : > { %v404_v58 = vmul.f32 1.442695, %v1568_v56  ;;  %v382_v59 = vpop.xlane.xlu0 %381 }
  0xaf   : > { %1229 = vpow2.f32 %v402_v57  ;;  %v1573_v60 = vsub.f32 %v1488_v20, %v382_v59  ;;  %v385_v61 = vpop.xlane.xlu1 %384 }
  0xb0   : > { %1231 = vpow2.f32 %v404_v58  ;;  %v1576_v62 = vsub.f32 %v1491_v21, %v385_v61  ;;  %v530_v21 = vld [vmem:[%s1592_s18] sm:$0xff] }
  0xb1   : > { %v406_v63 = vmul.f32 1.442695, %v1573_v60 }
  0xb2   : > { %v408_v0 = vmul.f32 1.442695, %v1576_v62 }
  0xb3   : > { %1233 = vpow2.f32 %v406_v63 }
  0xb4   : > { %v1222_v1 = vpop.eup %1221  ;;  %1235 = vpow2.f32 %v408_v0 }
  0xb5   : > { %v1224_v2 = vpop.eup %1223  ;;  %v410_v3 = vsel %vm361_vm1, %v1222_v1, 0.0 }
  0xb6   : > { %411 = vadd.xlane.f32.xlu0 %v410_v3  ;;  %v416_v4 = vsel %vm361_vm1, %v1224_v2, 0.0  ;;  %v1612_v3 = vld [vmem:[%s1609_s23] sm:$0xff] }
  0xb7   : > { %vm474_vm2 = vcmp.gt.f32.partialorder %v1612_v3, 0.0 }
  0xb8   : > { %v1226_v5 = vpop.eup %1225 }
  0xb9   : > { %v1228_v6 = vpop.eup %1227  ;;  %v413_v7 = vsel %vm361_vm1, %v1226_v5, 0.0  ;;  %v1615_v5 = vld [vmem:[%s1609_s23 + $0x8] sm:$0xff] }
  0xba   : > { %417 = vadd.xlane.f32.xlu0 %v416_v4  ;;  %414 = vadd.xlane.f32.xlu1 %v413_v7  ;;  %v419_v8 = vsel %vm361_vm1, %v1228_v6, 0.0  ;;  %vm475_vm3 = vcmp.gt.f32.partialorder %v1615_v5, 0.0  ;;  %v482_v7 = vsel %vm474_vm2, %v1612_v3, 1.0 }
  0xbc   : > { %v1230_v9 = vpop.eup %1229 }
  0xbd   : > { %v1232_v10 = vpop.eup %1231  ;;  %v422_v11 = vsel %vm361_vm1, %v1230_v9, 0.0  ;;  %v483_v9 = vsel %vm475_vm3, %v1615_v5, 1.0 }
  0xbe   : > { %420 = vadd.xlane.f32.xlu1 %v419_v8  ;;  %423 = vadd.xlane.f32.xlu0 %v422_v11  ;;  %v425_v12 = vsel %vm361_vm1, %v1232_v10, 0.0  ;;  %v1626_v10 = vld [vmem:[%s1609_s23 + $0x10] sm:$0xff]  ;;  %v1629_v11 = vld [vmem:[%s1609_s23 + $0x18] sm:$0xff] }
  0xbf   : > { %vm476_vm4 = vcmp.gt.f32.partialorder %v1626_v10, 0.0  ;;  %vm477_vm5 = vcmp.gt.f32.partialorder %v1629_v11, 0.0 }
  0xc0   : > { %v1234_v13 = vpop.eup %1233 }
  0xc1   : > { %v1236_v14 = vpop.eup %1235  ;;  %v428_v15 = vsel %vm361_vm1, %v1234_v13, 0.0 }
  0xc2   : > { %426 = vadd.xlane.f32.xlu1 %v425_v12  ;;  %429 = vadd.xlane.f32.xlu0 %v428_v15  ;;  %v431_v16 = vsel %vm361_vm1, %v1236_v14, 0.0  ;;  %v484_v14 = vsel %vm476_vm4, %v1626_v10, 1.0  ;;  %v485_v15 = vsel %vm477_vm5, %v1629_v11, 1.0 }
  0xc6   : > { %432 = vadd.xlane.f32.xlu1 %v431_v16  ;;  %v1640_v16 = vld [vmem:[%s1609_s23 + $0x20] sm:$0xff] }
  0xc7   : > { %vm478_vm6 = vcmp.gt.f32.partialorder %v1640_v16, 0.0 }
  0xd8   : > { %v1092_v18 = vpop.f32.mrf.mxu0 }
  0xd9   : > { %v701_v20 = vsub.f32 %v1092_v18, %v1050_v17  ;;  %v1643_v18 = vld [vmem:[%s1609_s23 + $0x28] sm:$0xff] }
  0xda   : > { %v655_v22 = vpop.f32.mrf.mxu0  ;;  %vm479_vm7 = vcmp.gt.f32.partialorder %v1643_v18, 0.0 }
  0xdb   : > { %v700_v23 = vsub.f32 %v655_v22, %v1050_v17  ;;  %v709_v24 = vsub.f32 %v701_v20, %v531_v19  ;;  %v486_v22 = vsel %vm478_vm6, %v1640_v16, 1.0 }
  0xdc   : > { %v1095_v25 = vpop.f32.mrf.mxu0 }
  0xdd   : > { %v708_v26 = vsub.f32 %v700_v23, %v530_v21  ;;  %v703_v28 = vsub.f32 %v1095_v25, %v1050_v17  ;;  %v717_v33 = vmul.f32 %v709_v24, %v709_v24 }
  0xde   : > { %v665_v29 = vpop.f32.mrf.mxu0 }
  0xdf   : > { %v716_v31 = vmul.f32 %v708_v26, %v708_v26  ;;  %v702_v32 = vsub.f32 %v665_v29, %v1050_v17  ;;  %v711_v34 = vsub.f32 %v703_v28, %v533_v27  ;;  %v487_v26 = vsel %vm479_vm7, %v1643_v18, 1.0  ;;  %v1654_v27 = vld [vmem:[%s1609_s23 + $0x30] sm:$0xff] }
  0xe0   : > { %v1098_v35 = vpop.f32.mrf.mxu0  ;;  %vm480_vm8 = vcmp.gt.f32.partialorder %v1654_v27, 0.0 }
  0xe1   : > { %v705_v37 = vsub.f32 %v1098_v35, %v1050_v17  ;;  %1134 = vmatprep.mubr.f32.mxu0 %v716_v31  ;;  %v710_v38 = vsub.f32 %v702_v32, %v532_v30  ;;  %v719_v45 = vmul.f32 %v711_v34, %v711_v34  ;;  %v1657_v31 = vld [vmem:[%s1609_s23 + $0x38] sm:$0xff]  ;;  %s1291_s23 = scalar_lea.vmem %s1290_s22, 256 }
  0xe2   : > { %v675_v40 = vpop.f32.mrf.mxu0  ;;  %1135 = vmatmul.mubr.f32.vlgmr.msra.gmra.mxu0 %v717_v33  ;;  %vm481_vm9 = vcmp.gt.f32.partialorder %v1657_v31, 0.0  ;;  %p1293_p1 = scmp.lt.s32.totalorder %s1291_s23, %s1285_s21 }
  0xe3   : > { %v704_v41 = vsub.f32 %v675_v40, %v1050_v17  ;;  %v718_v43 = vmul.f32 %v710_v38, %v710_v38  ;;  %v713_v46 = vsub.f32 %v705_v37, %v535_v36  ;;  %v488_v40 = vsel %vm480_vm8, %v1654_v27, 1.0 }
  0xe4   : > { %v1101_v47 = vpop.f32.mrf.mxu0  ;;  %p1294_p2 = por %p1293_p1, %p1292_p0 }
  0xe5   : > { %v712_v49 = vsub.f32 %v704_v41, %v534_v39  ;;  %v707_v52 = vsub.f32 %v1101_v47, %v1050_v17  ;;  %1137 = vmatprep.mubr.f32.mxu1 %v718_v43  ;;  %v721_v59 = vmul.f32 %v713_v46, %v713_v46 }
  0xe6   : > { %v685_v55 = vpop.f32.mrf.mxu0  ;;  %1138 = vmatmul.mubr.f32.vlgmr.msra.gmra.mxu1 %v719_v45  ;;  %p1295_p3 = pnand %p1294_p2, %p1288_p13 }
  0xe7   : > { %v720_v57 = vmul.f32 %v712_v49, %v712_v49  ;;  %v706_v58 = vsub.f32 %v685_v55, %v1050_v17  ;;  %v715_v61 = vsub.f32 %v707_v52, %v537_v51  ;;  %v489_v49 = vsel %vm481_vm9, %v1657_v31, 1.0 }
  0xe9   : > { %v714_v63 = vsub.f32 %v706_v58, %v536_v53  ;;  %1140 = vmatprep.mubr.f32.mxu1 %v720_v57  ;;  %v723_v1 = vmul.f32 %v715_v61, %v715_v61 }
  0xea   : > { %1141 = vmatmul.mubr.f32.gmra.mxu1 %v721_v59 }
  0xeb   : > { %v722_v0 = vmul.f32 %v714_v63, %v714_v63 }
  0xed   : > { %1143 = vmatprep.mubr.f32.mxu1 %v722_v0 }
  0xee   : > { %1144 = vmatmul.mubr.f32.gmra.mxu1 %v723_v1 }
 0x13f   : > { %v412_v4 = vpop.xlane.xlu0 %411 }
 0x143   : > { %v415_v2 = vpop.xlane.xlu1 %414  ;;  %v418_v8 = vpop.xlane.xlu0 %417 }
 0x144   : > { %1237 = vlog2.f32 %v415_v2 }
 0x145   : > { %1239 = vlog2.f32 %v412_v4 }
 0x146   : > { %1241 = vlog2.f32 %v482_v7 }
 0x147   : > { %v421_v6 = vpop.xlane.xlu1 %420  ;;  %1243 = vlog2.f32 %v483_v9  ;;  %v424_v13 = vpop.xlane.xlu0 %423 }
 0x148   : > { %1245 = vlog2.f32 %v421_v6 }
 0x149   : > { %1247 = vlog2.f32 %v418_v8 }
 0x14b   : > { %v427_v12 = vpop.xlane.xlu1 %426  ;;  %v430_v19 = vpop.xlane.xlu0 %429 }
 0x14c   : > { %1249 = vlog2.f32 %v427_v12 }
 0x14d   : > { %1251 = vlog2.f32 %v484_v14 }
 0x14e   : > { %1253 = vlog2.f32 %v424_v13 }
 0x14f   : > { %v433_v17 = vpop.xlane.xlu1 %432  ;;  %1255 = vlog2.f32 %v485_v15 }
 0x150   : > { %1257 = vlog2.f32 %v433_v17 }
 0x151   : > { %v1238_v20 = vpop.eup %1237  ;;  %1259 = vlog2.f32 %v430_v19 }
 0x152   : > { %v1240_v21 = vpop.eup %1239  ;;  %v437_v24 = vmul.f32 0.6931472, %v1238_v20  ;;  %1261 = vlog2.f32 %v486_v22 }
 0x153   : > { %v1242_v23 = vpop.eup %1241  ;;  %v435_v29 = vmul.f32 0.6931472, %v1240_v21  ;;  %1263 = vlog2.f32 %v487_v26 }
 0x154   : > { %v1244_v25 = vpop.eup %1243  ;;  %v451_v33 = vsub.f32 %v1557_v48, %v437_v24  ;;  %v491_v36 = vmul.f32 0.6931472, %v1242_v23  ;;  %1265 = vlog2.f32 %v488_v40 }
 0x155   : > { %v1246_v28 = vpop.eup %1245  ;;  %v493_v32 = vmul.f32 0.6931472, %v1244_v25  ;;  %v450_v37 = vsub.f32 %v1549_v42, %v435_v29  ;;  %1267 = vlog2.f32 %v489_v49 }
 0x156   : > { %v1248_v30 = vpop.eup %1247  ;;  %v441_v34 = vmul.f32 0.6931472, %v1246_v28  ;;  %v460_v48 = vmul.f32 1.442695, %v451_v33 }
 0x157   : > { %v439_v38 = vmul.f32 0.6931472, %v1248_v30  ;;  %v507_v43 = vsub.f32 %v493_v32, %v451_v33  ;;  %v506_v51 = vsub.f32 %v491_v36, %v450_v37  ;;  %v458_v55 = vmul.f32 1.442695, %v450_v37 }
 0x158   : > { %v453_v46 = vsub.f32 %v1560_v50, %v441_v34  ;;  %1269 = vpow2.f32 %v460_v48 }
 0x159   : > { %v1250_v35 = vpop.eup %1249  ;;  %v452_v53 = vsub.f32 %v1552_v44, %v439_v38  ;;  %v515_v59 = vmul.f32 %v507_v43, %v1615_v5  ;;  %v514_v1 = vmul.f32 %v506_v51, %v1612_v3  ;;  %1271 = vpow2.f32 %v458_v55 }
 0x15a   : > { %v1252_v39 = vpop.eup %1251  ;;  %v445_v47 = vmul.f32 0.6931472, %v1250_v35  ;;  %v464_v50 = vmul.f32 1.442695, %v453_v46 }
 0x15b   : > { %v1254_v41 = vpop.eup %1253  ;;  %v495_v52 = vmul.f32 0.6931472, %v1252_v39  ;;  %v462_v6 = vmul.f32 1.442695, %v452_v53  ;;  %v523_v8 = vsel %vm475_vm3, %v515_v59, 0.0 }
 0x15c   : > { %v1256_v45 = vpop.eup %1255  ;;  %v443_v57 = vmul.f32 0.6931472, %v1254_v41  ;;  %v455_v63 = vsub.f32 %v1568_v56, %v445_v47  ;;  %1273 = vpow2.f32 %v464_v50  ;;  %v522_v56 = vsel %vm474_vm2, %v514_v1, 0.0 }
 0x15d   : > { %v1258_v42 = vpop.eup %1257  ;;  %v497_v61 = vmul.f32 0.6931472, %v1256_v45  ;;  %v508_v2 = vsub.f32 %v495_v52, %v452_v53  ;;  %v862_v19 = vsel %vm361_vm1, %v523_v8, 0.0  ;;  %1275 = vpow2.f32 %v462_v6 }
 0x15e   : > { %v1260_v58 = vpop.eup %1259  ;;  %v449_v0 = vmul.f32 0.6931472, %v1258_v42  ;;  %v454_v44 = vsub.f32 %v1565_v54, %v443_v57  ;;  %v468_v13 = vmul.f32 1.442695, %v455_v63  ;;  %v861_v22 = vsel %vm361_vm1, %v522_v56, 0.0 }
 0x15f   : > { %v1262_v4 = vpop.eup %1261  ;;  %v447_v7 = vmul.f32 0.6931472, %v1260_v58  ;;  %v509_v9 = vsub.f32 %v497_v61, %v453_v46  ;;  %v516_v15 = vmul.f32 %v508_v2, %v1626_v10  ;;  %v863_v24 = vadd.f32 %v862_v19, %v861_v22 }
 0x160   : > { %v1264_v12 = vpop.eup %1263  ;;  %v1678_v14 = vsub.f32 %v1576_v62, %v449_v0  ;;  %v499_v17 = vmul.f32 0.6931472, %v1262_v4  ;;  %v466_v54 = vmul.f32 1.442695, %v454_v44  ;;  %1277 = vpow2.f32 %v468_v13 }
 0x161   : > { %v456_v5 = vsub.f32 %v1573_v60, %v447_v7  ;;  %v517_v20 = vmul.f32 %v509_v9, %v1629_v11  ;;  %v501_v21 = vmul.f32 0.6931472, %v1264_v12  ;;  %v524_v3 = vsel %vm476_vm4, %v516_v15, 0.0  ;;  %v1266_v25 = vpop.eup %1265 }
 0x162   : > { %v472_v62 = vmul.f32 1.442695, %v1678_v14  ;;  %v510_v23 = vsub.f32 %v499_v17, %v454_v44  ;;  %1279 = vpow2.f32 %v466_v54  ;;  %v1268_v29 = vpop.eup %1267  ;;  %v864_v30 = vsel %vm361_vm1, %v524_v3, 0.0 }
 0x163   : > { %v470_v26 = vmul.f32 1.442695, %v456_v5  ;;  %v511_v28 = vsub.f32 %v501_v21, %v455_v63  ;;  %v525_v60 = vsel %vm477_vm5, %v517_v20, 0.0  ;;  %v503_v35 = vmul.f32 0.6931472, %v1266_v25 }
 0x164   : > { %1281 = vpow2.f32 %v472_v62  ;;  %v518_v33 = vmul.f32 %v510_v23, %v1640_v16  ;;  %v865_v10 = vadd.f32 %v864_v30, %v863_v24  ;;  %v866_v37 = vsel %vm361_vm1, %v525_v60, 0.0 }
 0x165   : > { %v1270_v32 = vpop.eup %1269  ;;  %1283 = vpow2.f32 %v470_v26  ;;  %v505_v40 = vmul.f32 0.6931472, %v1268_v29  ;;  %v519_v11 = vmul.f32 %v511_v28, %v1643_v18  ;;  %v512_v46 = vsub.f32 %v503_v35, %v456_v5 }
 0x166   : > { %v1272_v38 = vpop.eup %1271  ;;  %v526_v47 = vsel %vm478_vm6, %v518_v33, 0.0  ;;  %v867_v49 = vadd.f32 %v866_v37, %v865_v10 }
 0x167   : > { %v513_v55 = vsub.f32 %v505_v40, %v1678_v14  ;;  %v527_v57 = vsel %vm479_vm7, %v519_v11, 0.0  ;;  %v868_v61 = vsel %vm361_vm1, %v526_v47, 0.0  ;;  %v520_v63 = vmul.f32 %v512_v46, %v1654_v27 }
 0x168   : > { %v869_v0 = vadd.f32 %v868_v61, %v867_v49  ;;  %v870_v4 = vsel %vm361_vm1, %v527_v57, 0.0 }
 0x169   : > { %v1274_v45 = vpop.eup %1273  ;;  %v521_v18 = vmul.f32 %v513_v55, %v1657_v31  ;;  %v528_v13 = vsel %vm480_vm8, %v520_v63, 0.0 }
 0x16a   : > { %v1276_v52 = vpop.eup %1275  ;;  %v871_v14 = vadd.f32 %v870_v4, %v869_v0  ;;  %v872_v21 = vsel %vm361_vm1, %v528_v13, 0.0 }
 0x16b   : > { %v529_v54 = vsel %vm481_vm9, %v521_v18, 0.0 }
 0x16c   : > { %v873_v22 = vadd.f32 %v872_v21, %v871_v14  ;;  %v874_v62 = vsel %vm361_vm1, %v529_v54, 0.0 }
 0x16d   : > { %v1278_v50 = vpop.eup %1277 }
 0x16e   : > { %v875_v3 = vadd.f32 %v874_v62, %v873_v22 }
 0x16f   : > { %v1280_v6 = vpop.eup %1279 }
 0x171   : > { %v1282_v9 = vpop.eup %1281 }
 0x172   : > { %v1284_v17 = vpop.eup %1283 }
 0x1a2   : > { %v1136_v34 = vpop.f32.mrf.mxu0 }
 0x1a3   : > { %v830_v36 = vmul.f32 %v1270_v32, %v1136_v34 }
 0x1a4   : > { %v790_v39 = vpop.f32.mrf.mxu0 }
 0x1a5   : > { %v829_v41 = vmul.f32 %v1272_v38, %v790_v39  ;;  %v840_v43 = vsel %vm361_vm1, %v830_v36, 0.0 }
 0x1a6   : > { %v1139_v48 = vpop.f32.mrf.mxu1  ;;  %841 = vadd.xlane.f32.xlu1 %v840_v43 }
 0x1a7   : > { %v832_v42 = vmul.f32 %v1274_v45, %v1139_v48  ;;  %v837_v51 = vsel %vm361_vm1, %v829_v41, 0.0 }
 0x1a8   : > { %v800_v53 = vpop.f32.mrf.mxu1  ;;  %838 = vadd.xlane.f32.xlu0 %v837_v51 }
 0x1a9   : > { %v831_v58 = vmul.f32 %v1276_v52, %v800_v53  ;;  %v846_v59 = vsel %vm361_vm1, %v832_v42, 0.0 }
 0x1aa   : > { %v1142_v16 = vpop.f32.mrf.mxu1  ;;  %847 = vadd.xlane.f32.xlu1 %v846_v59 }
 0x1ab   : > { %v834_v1 = vmul.f32 %v1278_v50, %v1142_v16  ;;  %v843_v2 = vsel %vm361_vm1, %v831_v58, 0.0  ;;  %v910_v16 = vlaneseq }
 0x1ac   : > { %v810_v44 = vpop.f32.mrf.mxu1  ;;  %844 = vadd.xlane.f32.xlu0 %v843_v2 }
 0x1ad   : > { %v833_v7 = vmul.f32 %v1280_v6, %v810_v44  ;;  %v852_v8 = vsel %vm361_vm1, %v834_v1, 0.0  ;;  %v911_v63 = vand.u32 127, %v910_v16 }
 0x1ae   : > { %v1145_v12 = vpop.f32.mrf.mxu1  ;;  %853 = vadd.xlane.f32.xlu1 %v852_v8 }
 0x1af   : > { %v836_v56 = vmul.f32 %v1282_v9, %v1145_v12  ;;  %v849_v15 = vsel %vm361_vm1, %v833_v7, 0.0  ;;  %vm912_vm11 = vcmp.eq.s32.totalorder %v911_v63, 0  ;;  %vm915_vm12 = vcmp.eq.s32.totalorder %v911_v63, 1 }
 0x1b0   : > { %v820_v19 = vpop.f32.mrf.mxu1  ;;  %850 = vadd.xlane.f32.xlu0 %v849_v15 }
 0x1b1   : > { %v835_v5 = vmul.f32 %v1284_v17, %v820_v19  ;;  %v858_v20 = vsel %vm361_vm1, %v836_v56, 0.0 }
 0x1b2   : > { %859 = vadd.xlane.f32.xlu1 %v858_v20 }
 0x1b3   : > { %v855_v27 = vsel %vm361_vm1, %v835_v5, 0.0 }
 0x1b4   : > { %856 = vadd.xlane.f32.xlu0 %v855_v27 }
 0x1b8   : > { %876 = vadd.xlane.f32.xlu0 %v875_v3 }
 0x22f   : > { %v842_v23 = vpop.xlane.xlu1 %841 }
 0x230   : > { %v887_v26 = vsel %vm885_vm10, %v842_v23, 0.0 }
 0x231   : > { %v839_v24 = vpop.xlane.xlu0 %838 }
 0x232   : > { %v886_v31 = vsel %vm885_vm10, %v839_v24, 0.0 }
 0x233   : > { %v848_v25 = vpop.xlane.xlu1 %847  ;;  %v888_v28 = vadd.f32 %v887_v26, %v886_v31 }
 0x234   : > { %v891_v33 = vsel %vm885_vm10, %v848_v25, 0.0 }
 0x235   : > { %v845_v60 = vpop.xlane.xlu0 %844 }
 0x236   : > { %v889_v29 = vsel %vm885_vm10, %v845_v60, 0.0 }
 0x237   : > { %v890_v30 = vadd.f32 %v889_v29, %v888_v28  ;;  %v854_v32 = vpop.xlane.xlu1 %853 }
 0x238   : > { %v895_v37 = vsel %vm885_vm10, %v854_v32, 0.0 }
 0x239   : > { %v892_v34 = vadd.f32 %v891_v33, %v890_v30  ;;  %v851_v35 = vpop.xlane.xlu0 %850 }
 0x23a   : > { %v893_v10 = vsel %vm885_vm10, %v851_v35, 0.0 }
 0x23b   : > { %v894_v36 = vadd.f32 %v893_v10, %v892_v34  ;;  %v860_v38 = vpop.xlane.xlu1 %859 }
 0x23c   : > { %v899_v43 = vsel %vm885_vm10, %v860_v38, 0.0 }
 0x23d   : > { %v896_v39 = vadd.f32 %v895_v37, %v894_v36  ;;  %v857_v40 = vpop.xlane.xlu0 %856 }
 0x23e   : > { %v897_v11 = vsel %vm885_vm10, %v857_v40, 0.0 }
 0x23f   : > { %v898_v41 = vadd.f32 %v897_v11, %v896_v39 }
 0x241   : > { %v877_v45 = vpop.xlane.xlu0 %876  ;;  %v900_v48 = vadd.f32 %v899_v43, %v898_v41 }
 0x242   : > { %v878_v46 = vrot.slane %v877_v45, 4 }
 0x243   : > { %901 = vadd.xlane.f32.xlu1 %v900_v48 }
 0x244   : > { %v879_v47 = vadd.f32 %v878_v46, %v877_v45 }
 0x246   : > { %v880_v49 = vrot.slane %v879_v47, 2 }
 0x248   : > { %v881_v42 = vadd.f32 %v880_v49, %v879_v47 }
 0x24a   : > { %v882_v51 = vrot.slane %v881_v42, 1 }
 0x24c   : > { %v883_v52 = vadd.f32 %v882_v51, %v881_v42 }
 0x24e   : > { %1178 = vpush %v883_v52 }
 0x27f   : > { %s1179_s8 = spop %1178 }
 0x280   : > { %v913_v0 = vstv %s1179_s8 }
 0x281   : > { %v914_v2 = vsel %vm912_vm11, %v913_v0, 0.0 }
 0x2cc   : > { %v902_v53 = vpop.xlane.xlu1 %901 }
 0x2cd   : > { %v903_v55 = vrot.slane %v902_v53, 4 }
 0x2cf   : > { %v904_v57 = vadd.f32 %v903_v55, %v902_v53 }
 0x2d1   : > { %v905_v58 = vrot.slane %v904_v57, 2 }
 0x2d3   : > { %v906_v59 = vadd.f32 %v905_v58, %v904_v57 }
 0x2d5   : > { %v907_v61 = vrot.slane %v906_v59, 1 }
 0x2d7   : > { %v908_v50 = vadd.f32 %v907_v61, %v906_v59 }
 0x2d9   : > { %1180 = vpush %v908_v50 }
 0x30a   : > { %s1181_s13 = spop %1180 }
 0x30b   : > { %v916_v1 = vstv %s1181_s13 }
 0x30c   : > { %v917_v4 = vsel %vm915_vm12, %v916_v1, 0.0 }
 0x30d   : > { %v918_v6 = vadd.f32 %v917_v4, %v914_v2 }
 0x30f   : > { %919 = vst [vmem:[%s320_s14] sm:$0xff] %v918_v6 }
 0x310   : > { %1298 = shalt.err (!%p1295_p3)
}
 0x311   : > { %s1299_s29 = scalar_lea.hbm %s932_s19, 128  ;;  %s1303_s9 = scalar_lea.hbm %s1768_s7, 512 }
 0x312   : > { %p1300_p4 = scmp.ne.s32.totalorder %s932_s19, %s1299_s29  ;;  %p1304_p9 = scmp.lt.s32.totalorder %s932_s19, %s1768_s7 }
 0x313   : > { %p1305_p10 = scmp.lt.s32.totalorder %s1303_s9, %s1299_s29 }
 0x314   : > { %p1301_p7 = pnand %p1300_p4, %p1426_p5 }
 0x315   : > { %p1306_p11 = por %p1305_p10, %p1304_p9 }
 0x316   : > { %p1302_p8 = pneg %p1301_p7 }
 0x318   : > { %p1307_p12 = pnand %p1306_p11, %p1302_p8 }
 0x31a   : > { %1310 = shalt.err (!%p1307_p12)
}
 0x31b   : > { %1182 = dma.vmem_to_hbm [thread:$0]  (%p1426_p5), %s935_s15, 128, %s932_s19, %s921_s20  }
 0x31c PF: > { %p1188_p13 = scmp.ge.s32.totalorder %s1345_s27, 2  ;;  %s946_s17 = sand.u32 1, %s1333_s24  }
 0x31d   : > { %s947_s18 = scalar_lea.sflag [#allocation3], %s946_s17 }
 0x31e   : > { %p1185_p0 = pnand %p1188_p13, %p1430_p6 }
 0x320   : > { %p1186_p1 = pneg %p1185_p0 }
 0x322   : > { %1328 = dma.done.wait (%p1186_p1), %s947_s18, 128  }
 0x323   : > { %1330 = vsyncadd (%p1186_p1), %s947_s18, 4294967168  ;;  %p17_p2 = scmp.ge.s32.totalorder %s1413_s30, 6   ;;  %s1771_s24 = smov %s1337_s25 }
 0x324   : > { %s1772_s25 = smov %s1341_s26  ;;  %s1773_s26 = smov %s1424_s10 }
 0x325   : > { %s1774_s27 = smov %s1413_s30  ;;  %19 = sbr.rel (!%p17_p2) target bundleno = 3 (0x3), region = 92 }
 0x32a   :  { %952 = vsyncpa [#allocation3], 1 }
 0x32b   :  { %954 = vsyncpa [#allocation3 + $0x1], 1 }

</bundles_post_ra>
